<compile_context>
chip_gen: v5e
topology: v5e:2x2
jax: 0.10.0
libtpu: 0.0.40
codegen_flags: <defaults>
</compile_context>

<pallas_src>
import functools

import jax
import jax.numpy as jnp
from jax import lax
from jax.experimental import pallas as pl
from jax.experimental.pallas import tpu as pltpu


def _time_embedding_kernel(x_ref, w_ref, b_ref, o_ref):
    # x_ref: (TB, D)   w_ref: (TN, D)  (natural nn.Linear layout)
    # b_ref: (1, TN)   o_ref: (TB, TN)
    x = x_ref[...]
    # SiLU in the native operand dtype; sigmoid goes to the EUP slot, the
    # multiply to the VPU.  (On v5e, which lacks bf16 VPU/EUP, Mosaic inserts
    # the needed promotion automatically.)
    silu = x * jax.nn.sigmoid(x)
    # y = silu @ W.T : contract over D on both operands -> MXU matmul with
    # f32 accumulation, consuming W as [N, D] (no transpose copy).
    acc = lax.dot_general(
        silu, w_ref[...],
        dimension_numbers=(((1,), (1,)), ((), ())),
        preferred_element_type=jnp.float32)
    o_ref[...] = (acc + b_ref[...].astype(jnp.float32)).astype(o_ref.dtype)


def _round_up(v, m):
    return ((v + m - 1) // m) * m


@functools.partial(jax.jit, static_argnames=("tile_b", "tile_n",
                                             "vmem_limit_bytes"))
def time_embedding(x, weight, bias, *, tile_b=None, tile_n=None,
                   vmem_limit_bytes=None):
    """
    x:      [B, D]      (D = t_emb_dim)
    weight: [N, D]      (PyTorch nn.Linear layout, N = n_out) -- used as-is
    bias:   [N]
    returns [B, N]
    """
    B, D = x.shape
    N, D2 = weight.shape
    assert D == D2, (weight.shape, x.shape)
    assert bias.shape == (N,)

    # --- batch tiling: full batch unless huge; otherwise sublane multiples ---
    if tile_b is None:
        tile_b = B if B <= 1024 else 512
    tile_b = min(tile_b, B)
    if tile_b != B:
        tile_b = _round_up(tile_b, 8)

    # --- output-feature tiling: lane-dense, VMEM-budget capped ---------------
    if tile_n is None:
        tile_n = N
        # Only kicks in for large N/D: keep the double-buffered W tile + x
        # tile + out tile well within scoped VMEM on every generation
        # (v7x has 64 MiB physical / 32 MiB default scoped).
        budget = 24 * 1024 * 1024
        x_bytes = jnp.dtype(x.dtype).itemsize
        w_bytes = jnp.dtype(weight.dtype).itemsize

        def _vmem_estimate(tn):
            return (2 * tn * D * w_bytes            # W tile (double-buffered)
                    + 2 * tile_b * D * x_bytes      # x tile
                    + 2 * tile_b * tn * x_bytes     # out tile
                    + 2 * tn * w_bytes)             # bias tile

        while (tile_n > 256 and tile_n % 256 == 0
               and _vmem_estimate(tile_n) > budget):
            tile_n //= 2
    tile_n = min(tile_n, N)
    if tile_n != N:
        tile_n = _round_up(tile_n, 128)   # lane-dense output stores

    grid = (pl.cdiv(B, tile_b), pl.cdiv(N, tile_n))

    # Bias as a (1, N) row so it broadcasts across the batch sublanes.
    b2d = bias.reshape(1, N)

    flops = 2 * B * N * D
    bytes_accessed = (x.size * x.dtype.itemsize
                      + weight.size * weight.dtype.itemsize
                      + bias.size * bias.dtype.itemsize
                      + B * N * x.dtype.itemsize)

    return pl.pallas_call(
        _time_embedding_kernel,
        out_shape=jax.ShapeDtypeStruct((B, N), x.dtype),
        grid_spec=pltpu.PrefetchScalarGridSpec(
            num_scalar_prefetch=0,
            grid=grid,
            in_specs=[
                pl.BlockSpec((tile_b, D), lambda i, j: (i, 0)),   # x tile
                pl.BlockSpec((tile_n, D), lambda i, j: (j, 0)),   # W tile [N,D]
                pl.BlockSpec((1, tile_n), lambda i, j: (0, j)),   # bias tile
            ],
            out_specs=pl.BlockSpec((tile_b, tile_n), lambda i, j: (i, j)),
        ),
        compiler_params=pltpu.CompilerParams(
            dimension_semantics=("parallel", "parallel"),
            vmem_limit_bytes=vmem_limit_bytes),
        cost_estimate=pl.CostEstimate(flops=flops,
                                      transcendentals=B * D,
                                      bytes_accessed=bytes_accessed),
    )(x, weight, b2d)


if __name__ == "__main__":
    # Small shapes consistent with the module: t_emb_dim=128, n_out=256, batch=8.
    B, T_EMB_DIM, N_OUT = 8, 128, 256

    key = jax.random.PRNGKey(0)
    kx, kw, kb = jax.random.split(key, 3)

    x = jax.random.normal(kx, (B, T_EMB_DIM), dtype=jnp.float32)
    # Deterministic "nn.Linear"-style parameters (synthetic, not a checkpoint).
    bound = 1.0 / (T_EMB_DIM ** 0.5)
    weight = jax.random.uniform(kw, (N_OUT, T_EMB_DIM), jnp.float32, -bound, bound)
    bias = jax.random.uniform(kb, (N_OUT,), jnp.float32, -bound, bound)

    # ---- f32 path: check against plain-JAX reference -----------------------
    out = jax.block_until_ready(time_embedding(x, weight, bias))
    ref = (x * jax.nn.sigmoid(x)) @ weight.T + bias
    assert out.shape == (B, N_OUT)
    assert jnp.allclose(out, ref, atol=1e-4, rtol=1e-4)

    # ---- bf16 path: native bf16 operands straight to the MXU (f32 acc) -----
    xb = x.astype(jnp.bfloat16)
    wb = weight.astype(jnp.bfloat16)
    out_bf16 = jax.block_until_ready(time_embedding(xb, wb, bias))
    ref_bf16 = ((xb.astype(jnp.float32) * jax.nn.sigmoid(xb.astype(jnp.float32)))
                @ wb.astype(jnp.float32).T + bias)
    assert out_bf16.shape == (B, N_OUT)
    assert jnp.allclose(out_bf16.astype(jnp.float32), ref_bf16,
                        atol=5e-2, rtol=5e-2)

    print("KERNEL_OK")
</pallas_src>

<mosaic_0001>
module attributes {stable_mosaic.version = 11 : i64} {
  func.func @_time_embedding_kernel(%arg0: i32, %arg1: i32, %arg2: memref<8x128xf32, #tpu.memory_space<vmem>>, %arg3: memref<256x128xf32, #tpu.memory_space<vmem>>, %arg4: memref<1x256xf32, #tpu.memory_space<vmem>>, %arg5: memref<8x256xf32, #tpu.memory_space<vmem>>) attributes {dimension_semantics = [#tpu.dimension_semantics<parallel>, #tpu.dimension_semantics<parallel>], iteration_bounds = array<i64: 1, 1>, scalar_prefetch = 0 : i64, scratch_operands = 0 : i64, tpu.core_type = #tpu.core_type<tc>, window_params = [{transform_indices = @transform_0, window_bounds = array<i64: 8, 128>}, {transform_indices = @transform_1, window_bounds = array<i64: 256, 128>}, {transform_indices = @transform_2, window_bounds = array<i64: 1, 256>}, {transform_indices = @transform_3, window_bounds = array<i64: 8, 256>}]} {
    %c0 = arith.constant 0 : index
    %c0_0 = arith.constant 0 : index
    %0 = vector.load %arg2[%c0, %c0_0] : memref<8x128xf32, #tpu.memory_space<vmem>>, vector<8x128xf32>
    %1 = arith.negf %0 : vector<8x128xf32>
    %2 = math.exp %1 : vector<8x128xf32>
    %cst = arith.constant 1.000000e+00 : f32
    %3 = vector.broadcast %cst : f32 to vector<8x128xf32>
    %4 = arith.addf %3, %2 : vector<8x128xf32>
    %5 = arith.divf %3, %4 : vector<8x128xf32>
    %6 = arith.mulf %0, %5 : vector<8x128xf32>
    %c0_1 = arith.constant 0 : index
    %c0_2 = arith.constant 0 : index
    %7 = vector.load %arg3[%c0_1, %c0_2] : memref<256x128xf32, #tpu.memory_space<vmem>>, vector<256x128xf32>
    %cst_3 = arith.constant dense<0.000000e+00> : vector<8x256xf32>
    %8 = tpu.matmul %6, %7, %cst_3 {dimension_numbers = #tpu.dot_dimension_numbers<[1], [1], [0], [0], [0, 0, 1, 0], [], []>} : vector<8x128xf32>, vector<256x128xf32>, vector<8x256xf32> -> vector<8x256xf32>
    %c0_4 = arith.constant 0 : index
    %c0_5 = arith.constant 0 : index
    %9 = vector.load %arg4[%c0_4, %c0_5] : memref<1x256xf32, #tpu.memory_space<vmem>>, vector<1x256xf32>
    %10 = vector.broadcast %9 : vector<1x256xf32> to vector<8x256xf32>
    %11 = arith.addf %8, %10 : vector<8x256xf32>
    %c0_6 = arith.constant 0 : index
    %c0_7 = arith.constant 0 : index
    %12 = vector.load %arg5[%c0_6, %c0_7] : memref<8x256xf32, #tpu.memory_space<vmem>>, vector<8x256xf32>
    tpu.vector_store %arg5[%c0_6, %c0_7], %11 {strides = array<i32>} : memref<8x256xf32, #tpu.memory_space<vmem>>, vector<8x256xf32>,
    return
  }
  func.func @transform_0(%arg0: i32, %arg1: i32) -> (i32, i32) {
    %c0_i32 = arith.constant 0 : i32
    %c0_i32_0 = arith.constant 0 : i32
    return %arg0, %c0_i32 : i32, i32
  }
  func.func @transform_1(%arg0: i32, %arg1: i32) -> (i32, i32) {
    %c0_i32 = arith.constant 0 : i32
    %c0_i32_0 = arith.constant 0 : i32
    return %arg1, %c0_i32 : i32, i32
  }
  func.func @transform_2(%arg0: i32, %arg1: i32) -> (i32, i32) {
    %c0_i32 = arith.constant 0 : i32
    %c0_i32_0 = arith.constant 0 : i32
    return %c0_i32, %arg1 : i32, i32
  }
  func.func @transform_3(%arg0: i32, %arg1: i32) -> (i32, i32) {
    %c0_i32 = arith.constant 0 : i32
    return %arg0, %arg1 : i32, i32
  }
}

</mosaic_0001>

<bundles_post_ra>
// kernel: time_embedding.1
= control target key start
LH: loop header
LB: loop body
LE: loop exit
PB: predicated region body
PF: predicated region fallthrough
CT: control target
= control target key end

     0   :  { %8 = vsyncpa [#allocation3], 0  ;;  %s293_s0 = inlined_call_operand.hbm [shape: f32[8,128], index: 0, kind: input, shape index: {}]   ;;  %s294_s1 = inlined_call_operand.hbm [shape: f32[256,128], index: 1, kind: input, shape index: {}]   ;;  %s295_s2 = inlined_call_operand.vmem [shape: f32[1,256], index: 2, kind: input, shape index: {}]   ;;  %s296_s3 = inlined_call_operand.hbm [shape: f32[8,256], index: 3, kind: output, shape index: {}]  }
   0x1   :  { %9 = vsyncpa [#allocation6], 0 }
   0x2   :  { %10 = vsyncpa [#allocation4], 0  ;;  %s16_s14 = sshll.u32 %s293_s0, 4  ;;  %s252_s15 = smov [#allocation2]   ;;  %s17_s14 = int_to_ptr.hbm [resolvable:$true] %s16_s14 }
   0x3   :  { %s18_s16 = sshll.u32 %s252_s15, 4  ;;  %s26_s19 = sshll.u32 %s294_s1, 4  ;;  %s19_s16 = int_to_ptr.vmem [resolvable:$true] %s18_s16  ;;  %s27_s19 = int_to_ptr.hbm [resolvable:$true] %s26_s19 }
   0x4   :  { %21 = dma.hbm_to_vmem [thread:$0]  %s17_s14, 128, %s19_s16, [#allocation3]  }
   0x5   :  { %s253_s20 = smov [#allocation5]   ;;  %s254_s22 = smov 128  }
   0x6   :  { %s28_s21 = sshll.u32 %s253_s20, 4  ;;  %s255_s23 = smov 8   ;;  %s29_s21 = int_to_ptr.vmem [resolvable:$true] %s28_s21 }
   0x7   :  { %34 = dma.hbm_to_vmem [thread:$0]  %s27_s19, 4096, %s29_s21, [#allocation6], %s254_s22, %s254_s22, %s255_s23  }
   0x8   :  { %246 = dma.done.wait [#allocation3], 128  }
   0x9   :  { %247 = vsyncadd [#allocation3], 4294967168 }
   0xa   :  { %248 = dma.done.wait [#allocation6], 4096  }
   0xb   :  { %249 = vsyncadd [#allocation6], 4294963200  ;;  %v81_v0 = vld [vmem:[#allocation5 + $0x78] sm:$0xff]  ;;  %v80_v2 = vld [vmem:[#allocation5 + $0x70] sm:$0xff]  ;;  %s256_s24 = smov [#allocation7]   ;;  %s153_s28 = sshll.u32 %s296_s3, 4  ;;  %s154_s28 = int_to_ptr.hbm [resolvable:$true] %s153_s28 }
   0xc   :  { %v97_v1 = vld [vmem:[#allocation5 + $0xf8] sm:$0xff]  ;;  %104 = vmatpush.xpose.msra.mxu0 %v81_v0  ;;  %v96_v3 = vld [vmem:[#allocation5 + $0xf0] sm:$0xff]  ;;  %v79_v4 = vld [vmem:[#allocation5 + $0x68] sm:$0xff]  ;;  %s151_s25 = sshll.u32 %s256_s24, 4  ;;  %s152_s25 = int_to_ptr.vmem [resolvable:$true] %s151_s25 }
   0xd   :  { %124 = vmatpush.xpose.msra.mxu1 %v97_v1  ;;  %v95_v5 = vld [vmem:[#allocation5 + $0xe8] sm:$0xff]  ;;  %v283_v6 = vld [vmem:[#allocation2] sm:$0xff]  ;;  %v78_v7 = vld [vmem:[#allocation5 + $0x60] sm:$0xff] }
   0xe   :  { %v94_v8 = vld [vmem:[#allocation5 + $0xe0] sm:$0xff]  ;;  %v164_v9 = vmul.f32 -1.442695, %v283_v6  ;;  %v77_v10 = vld [vmem:[#allocation5 + $0x58] sm:$0xff]  ;;  %v76_v12 = vld [vmem:[#allocation5 + $0x50] sm:$0xff] }
   0xf   :  { %v93_v11 = vld [vmem:[#allocation5 + $0xd8] sm:$0xff]  ;;  %v92_v13 = vld [vmem:[#allocation5 + $0xd0] sm:$0xff]  ;;  %v75_v15 = vld [vmem:[#allocation5 + $0x48] sm:$0xff] }
  0x10   :  { %105 = vmatpush.xpose.msra.mxu0 %v80_v2  ;;  %170 = vpow2.f32 %v164_v9  ;;  %v91_v16 = vld [vmem:[#allocation5 + $0xc8] sm:$0xff]  ;;  %v74_v18 = vld [vmem:[#allocation5 + $0x40] sm:$0xff]  ;;  %v73_v20 = vld [vmem:[#allocation5 + $0x38] sm:$0xff] }
  0x11   :  { %125 = vmatpush.xpose.msra.mxu1 %v96_v3  ;;  %v90_v19 = vld [vmem:[#allocation5 + $0xc0] sm:$0xff]  ;;  %v89_v21 = vld [vmem:[#allocation5 + $0xb8] sm:$0xff]  ;;  %v72_v22 = vld [vmem:[#allocation5 + $0x30] sm:$0xff] }
  0x12   :  { %v88_v23 = vld [vmem:[#allocation5 + $0xb0] sm:$0xff]  ;;  %v71_v25 = vld [vmem:[#allocation5 + $0x28] sm:$0xff]  ;;  %v70_v28 = vld [vmem:[#allocation5 + $0x20] sm:$0xff] }
  0x13   :  { %v87_v26 = vld [vmem:[#allocation5 + $0xa8] sm:$0xff]  ;;  %v86_v29 = vld [vmem:[#allocation5 + $0xa0] sm:$0xff]  ;;  %v69_v31 = vld [vmem:[#allocation5 + $0x18] sm:$0xff] }
  0x14   :  { %106 = vmatpush.xpose.msra.mxu0 %v79_v4  ;;  %v85_v32 = vld [vmem:[#allocation5 + $0x98] sm:$0xff]  ;;  %v68_v35 = vld [vmem:[#allocation5 + $0x10] sm:$0xff]  ;;  %v67_v40 = vld [vmem:[#allocation5 + $0x8] sm:$0xff] }
  0x15   :  { %126 = vmatpush.xpose.msra.mxu1 %v95_v5  ;;  %v84_v36 = vld [vmem:[#allocation5 + $0x90] sm:$0xff]  ;;  %v83_v41 = vld [vmem:[#allocation5 + $0x88] sm:$0xff]  ;;  %v66_v44 = vld [vmem:[#allocation5] sm:$0xff] }
  0x16   :  { %v171_v14 = vpop.eup %170  ;;  %v82_v45 = vld [vmem:[#allocation5 + $0x80] sm:$0xff]  ;;  %v98_v47 = vld [vmem:[%s295_s2] sm:$0x3] }
  0x17   :  { %v49_v17 = vadd.f32 1.0, %v171_v14  ;;  %v100_v48 = vperm.slane %v98_v47, 0  ;;  %v101_v49 = vperm.slane %v98_v47, 1 }
  0x18   :  { %107 = vmatpush.xpose.msra.mxu0 %v78_v7 }
  0x19   :  { %127 = vmatpush.xpose.msra.mxu1 %v94_v8  ;;  %172 = vrcp.f32 %v49_v17  ;;  %vm55_vm0 = vweird.f32 %v49_v17  ;;  %v61_v34 = vand.u32 2147483648, %v49_v17  ;;  %v59_v38 = vand.u32 2147483647, %v49_v17 }
  0x1b   :  { %v62_v39 = vor.u32 1.1754944e-38, %v61_v34  ;;  %vm60_vm3 = vcmp.eq.f32.partialorder %v59_v38, 8.507059e+37 }
  0x1c   :  { %108 = vmatpush.xpose.msra.mxu0 %v77_v10 }
  0x1d   :  { %128 = vmatpush.xpose.msra.mxu1 %v93_v11 }
  0x1f   :  { %v173_v24 = vpop.eup %172 }
  0x20   :  { %109 = vmatpush.xpose.msra.mxu0 %v76_v12  ;;  %v51_v27 = vmul.f32 %v173_v24, %v49_v17  ;;  %vm56_vm1 = vweird.f32 %v173_v24 }
  0x21   :  { %129 = vmatpush.xpose.msra.mxu1 %v92_v13  ;;  %vm57_vm2 = vmor %vm55_vm0, %vm56_vm1 }
  0x22   :  { %v52_v30 = vsub.f32 1.0, %v51_v27 }
  0x24   :  { %110 = vmatpush.xpose.msra.mxu0 %v75_v15  ;;  %v53_v33 = vmul.f32 %v173_v24, %v52_v30 }
  0x25   :  { %130 = vmatpush.xpose.msra.mxu1 %v91_v16 }
  0x26   :  { %v54_v37 = vadd.f32 %v173_v24, %v53_v33 }
  0x28   :  { %111 = vmatpush.xpose.msra.mxu0 %v74_v18  ;;  %v58_v42 = vsel %vm57_vm2, %v173_v24, %v54_v37 }
  0x29   :  { %131 = vmatpush.xpose.msra.mxu1 %v90_v19  ;;  %v63_v43 = vsel %vm60_vm3, %v62_v39, %v58_v42 }
  0x2a   :  { %v65_v46 = vmul.f32 %v63_v43, %v283_v6 }
  0x2c   :  { %112 = vmatpush.xpose.msra.mxu0 %v73_v20 }
  0x2d   :  { %132 = vmatpush.xpose.msra.mxu1 %v89_v21 }
  0x30   :  { %113 = vmatpush.xpose.msra.mxu0 %v72_v22 }
  0x31   :  { %133 = vmatpush.xpose.msra.mxu1 %v88_v23 }
  0x34   :  { %114 = vmatpush.xpose.msra.mxu0 %v71_v25 }
  0x35   :  { %134 = vmatpush.xpose.msra.mxu1 %v87_v26 }
  0x38   :  { %115 = vmatpush.xpose.msra.mxu0 %v70_v28 }
  0x39   :  { %135 = vmatpush.xpose.msra.mxu1 %v86_v29 }
  0x3c   :  { %116 = vmatpush.xpose.msra.mxu0 %v69_v31 }
  0x3d   :  { %136 = vmatpush.xpose.msra.mxu1 %v85_v32 }
  0x40   :  { %117 = vmatpush.xpose.msra.mxu0 %v68_v35 }
  0x41   :  { %137 = vmatpush.xpose.msra.mxu1 %v84_v36 }
  0x44   :  { %118 = vmatpush.xpose.msra.mxu0 %v67_v40 }
  0x45   :  { %138 = vmatpush.xpose.msra.mxu1 %v83_v41 }
  0x48   :  { %119 = vmatpush.xpose.msra.mxu0 %v66_v44 }
  0x49   :  { %139 = vmatpush.xpose.msra.mxu1 %v82_v45 }
  0x4b   :  { %120 = vmatmul.f32.vlgmr.msra.gmra.mxu0 %v65_v46 }
  0x4c   :  { %140 = vmatmul.f32.vlgmr.msra.gmra.mxu1 %v65_v46 }
  0xc8   :  { %v121_v50 = vpop.f32.mrf.mxu0 }
  0xc9   :  { %v141_v51 = vpop.f32.mrf.mxu1  ;;  %v122_v52 = vadd.f32 %v121_v50, %v100_v48 }
  0xca   :  { %v142_v53 = vadd.f32 %v141_v51, %v101_v49 }
  0xcb   :  { %144 = vst [vmem:[#allocation7] sm:$0xff] %v122_v52 }
  0xcc   :  { %145 = vst [vmem:[#allocation7 + $0x8] sm:$0xff] %v142_v53 }
  0xcd   :  { %156 = dma.vmem_to_hbm [thread:$0]  %s152_s25, 256, %s154_s28, [#allocation4]  }
  0xce   :  { %250 = dma.done.wait [#allocation4], 256  }
  0xcf   :  { %251 = vsyncadd [#allocation4], 4294967040 }
  0xd0   :  { %161 = vsyncpa [#allocation3], 1 }
  0xd1   :  { %162 = vsyncpa [#allocation6], 1 }
  0xd2   :  { %163 = vsyncpa [#allocation4], 1 }

</bundles_post_ra>
